<compile_context>
chip_gen: v7x
topology: tpu7x:2x2x1
jax: 0.10.0
libtpu: 0.0.40
codegen_flags: <defaults>
</compile_context>

<pallas_src>
import functools

import jax
import jax.numpy as jnp
from jax.experimental import pallas as pl
from jax.experimental.pallas import tpu as pltpu


def _layernorm_kernel(params_ref, x_ref, o_ref, *, eps: float, d_model: int):
    # params_ref: SMEM (2,) f32 -> [alpha, bias]
    # x_ref / o_ref: VMEM (tile_rows, d_model)
    alpha = params_ref[0]
    bias = params_ref[1]

    x = x_ref[...].astype(jnp.float32)

    mean = jnp.mean(x, axis=-1, keepdims=True)
    diff = x - mean
    # torch.Tensor.std() default: unbiased (divide by N-1)
    var = jnp.sum(diff * diff, axis=-1, keepdims=True) * jnp.float32(
        1.0 / (d_model - 1))
    std = jnp.sqrt(var)

    # Hoist the divide to the (tile_rows, 1) column, then broadcast a single FMA.
    scale = alpha / (std + jnp.float32(eps))
    o_ref[...] = (diff * scale + bias).astype(o_ref.dtype)


def _bytes_per_row(d_model: int, itemsize: int) -> int:
    # 2x input + 2x output double-buffered DMA buffers at input dtype width,
    # plus ~2 f32 tile-widths of in-kernel temporaries (f32 copy + diff).
    return 4 * d_model * itemsize + 8 * d_model


def _choose_tile_rows(rows: int, d_model: int, itemsize: int,
                      max_tile_rows: int, vmem_budget_bytes: int) -> int:
    """Largest 8-aligned row tile within the VMEM budget; >=2 grid steps when possible."""
    t = vmem_budget_bytes // max(_bytes_per_row(d_model, itemsize), 1)
    t = max(8, min(max_tile_rows, t))
    t = (t // 8) * 8
    if rows <= t:
        if rows >= 16:
            # Whole problem would fit in one block: split it so the "parallel"
            # grid axis has >= 2 steps and both v7x TensorCores get work.
            half = -(-rows // 2)
            return ((half + 7) // 8) * 8
        # Tiny problem: one block equal to the full array dims (always legal).
        return rows
    return t


def decoder_forward(x, encoder_output, src_mask, tgt_mask, *, alpha, bias,
                    layers=(), eps: float = 1e-6, max_tile_rows: int = 2048,
                    vmem_budget_bytes: int = 24 * 1024 * 1024):
    """Pallas implementation of Decoder.forward.

    x: (batch, seq_len, d_model)
    layers: sequence of callables (decoder blocks); empty here (see TODO above).
    alpha, bias: scalar learnable parameters of the final LayerNormalization
                 (may be traced arrays; they are passed through SMEM).
    """
    for layer in layers:
        x = layer(x, encoder_output, src_mask, tgt_mask)

    b, s, d = x.shape
    assert d > 1, "LayerNormalization with unbiased std requires d_model > 1"
    rows = b * s
    x2d = x.reshape(rows, d)  # contiguous reshape, no HBM copy

    itemsize = x2d.dtype.itemsize
    tile_rows = _choose_tile_rows(rows, d, itemsize, max_tile_rows,
                                  vmem_budget_bytes)
    grid = (pl.cdiv(rows, tile_rows),)  # partial last block handled by Pallas

    # Explicit scoped-VMEM limit: actual footprint + headroom, capped so the
    # same sizing is safe on v5e / v6e / v7x.
    footprint = tile_rows * _bytes_per_row(d, itemsize)
    vmem_limit = int(min(max(footprint + (4 << 20), 16 << 20), 32 << 20))

    # Learnable scalars -> SMEM (works with traced params, no recompiles).
    params = jnp.stack([jnp.asarray(alpha, jnp.float32).reshape(()),
                        jnp.asarray(bias, jnp.float32).reshape(())])

    kernel = functools.partial(_layernorm_kernel, eps=float(eps), d_model=d)

    out2d = pl.pallas_call(
        kernel,
        out_shape=jax.ShapeDtypeStruct((rows, d), x.dtype),
        grid=grid,
        in_specs=[
            pl.BlockSpec(memory_space=pltpu.MemorySpace.SMEM),   # [alpha, bias]
            pl.BlockSpec((tile_rows, d), lambda i: (i, 0)),
        ],
        out_specs=pl.BlockSpec((tile_rows, d), lambda i: (i, 0)),
        compiler_params=pltpu.CompilerParams(
            dimension_semantics=("parallel",),
            vmem_limit_bytes=vmem_limit),
    )(params, x2d)

    return out2d.reshape(b, s, d)


def decoder_forward_ref(x, encoder_output, src_mask, tgt_mask, *, alpha, bias,
                        layers=(), eps: float = 1e-6):
    """Pure-JAX reference matching the PyTorch semantics (unbiased std)."""
    for layer in layers:
        x = layer(x, encoder_output, src_mask, tgt_mask)
    xf = x.astype(jnp.float32)
    mean = jnp.mean(xf, axis=-1, keepdims=True)
    diff = xf - mean
    var = jnp.sum(diff * diff, axis=-1, keepdims=True) / (x.shape[-1] - 1)
    std = jnp.sqrt(var)
    out = jnp.float32(alpha) * diff / (std + jnp.float32(eps)) + jnp.float32(bias)
    return out.astype(x.dtype)


if __name__ == "__main__":
    key = jax.random.PRNGKey(0)

    # Deterministic parameter init matching nn.Parameter(torch.ones(1)) / torch.zeros(1)
    alpha = jnp.ones((1,), dtype=jnp.float32)
    bias = jnp.zeros((1,), dtype=jnp.float32)

    # --- primary small-shape test (batch=2, seq_len=8, d_model=32) ---
    batch, seq_len, d_model = 2, 8, 32
    kx, ke, kb = jax.random.split(key, 3)
    x = jax.random.normal(kx, (batch, seq_len, d_model), dtype=jnp.float32)
    encoder_output = jax.random.normal(ke, (batch, seq_len, d_model),
                                       dtype=jnp.float32)
    src_mask = jnp.ones((batch, 1, 1, seq_len), dtype=jnp.float32)
    tgt_mask = jnp.tril(jnp.ones((batch, 1, seq_len, seq_len), dtype=jnp.float32))

    out = decoder_forward(x, encoder_output, src_mask, tgt_mask,
                          alpha=alpha, bias=bias, layers=())
    out = jax.block_until_ready(out)
    ref = decoder_forward_ref(x, encoder_output, src_mask, tgt_mask,
                              alpha=alpha, bias=bias, layers=())
    assert out.shape == (batch, seq_len, d_model)
    assert jnp.allclose(out, ref, atol=1e-5, rtol=1e-5), "mismatch vs reference"

    # --- multi-block grid + partial last block (rows not a tile multiple) ---
    b2, s2, d2 = 4, 130, 32   # rows = 520
    kx2 = jax.random.fold_in(kb, 1)
    x2 = jax.random.normal(kx2, (b2, s2, d2), dtype=jnp.float32)
    out2 = decoder_forward(x2, None, None, None, alpha=alpha, bias=bias,
                           layers=(), max_tile_rows=256)
    out2 = jax.block_until_ready(out2)
    ref2 = decoder_forward_ref(x2, None, None, None, alpha=alpha, bias=bias,
                               layers=())
    assert jnp.allclose(out2, ref2, atol=1e-5, rtol=1e-5), "mismatch (tiled path)"

    # --- bf16 input, lane-dense d_model=128 (exercises dtype-aware tile sizing) ---
    b3, s3, d3 = 2, 16, 128
    kx3 = jax.random.fold_in(kb, 2)
    x3 = jax.random.normal(kx3, (b3, s3, d3), dtype=jnp.float32).astype(jnp.bfloat16)
    out3 = decoder_forward(x3, None, None, None, alpha=alpha, bias=bias, layers=())
    out3 = jax.block_until_ready(out3)
    ref3 = decoder_forward_ref(x3, None, None, None, alpha=alpha, bias=bias,
                               layers=())
    assert jnp.allclose(out3.astype(jnp.float32), ref3.astype(jnp.float32),
                        atol=2e-2, rtol=2e-2), "mismatch (bf16 path)"

    print("KERNEL_OK")
</pallas_src>

<mosaic_0001>
module attributes {stable_mosaic.version = 11 : i64} {
  func.func @_layernorm_kernel(%arg0: i32, %arg1: memref<2xf32, #tpu.memory_space<smem>>, %arg2: memref<8x32xf32, #tpu.memory_space<vmem>>, %arg3: memref<8x32xf32, #tpu.memory_space<vmem>>) attributes {dimension_semantics = [#tpu.dimension_semantics<parallel>], iteration_bounds = array<i64: 2>, scalar_prefetch = 0 : i64, scratch_operands = 0 : i64, tpu.core_type = #tpu.core_type<tc>, window_params = [{transform_indices = @transform_0, window_bounds = array<i64: 2>}, {transform_indices = @transform_1, window_bounds = array<i64: 8, 32>}, {transform_indices = @transform_2, window_bounds = array<i64: 8, 32>}]} {
    %c0 = arith.constant 0 : index
    %0 = memref.load %arg1[%c0] : memref<2xf32, #tpu.memory_space<smem>>
    %c1 = arith.constant 1 : index
    %1 = memref.load %arg1[%c1] : memref<2xf32, #tpu.memory_space<smem>>
    %c0_0 = arith.constant 0 : index
    %c0_1 = arith.constant 0 : index
    %2 = vector.load %arg2[%c0_0, %c0_1] : memref<8x32xf32, #tpu.memory_space<vmem>>, vector<8x32xf32>
    %cst = arith.constant dense<0.000000e+00> : vector<8xf32>
    %3 = vector.multi_reduction <add>, %2, %cst [1] : vector<8x32xf32> to vector<8xf32>
    %4 = vector.shape_cast %3 : vector<8xf32> to vector<8x1xf32>
    %cst_2 = arith.constant 3.200000e+01 : f32
    %5 = vector.broadcast %cst_2 : f32 to vector<8x1xf32>
    %6 = arith.divf %4, %5 : vector<8x1xf32>
    %7 = vector.broadcast %6 : vector<8x1xf32> to vector<8x32xf32>
    %8 = arith.subf %2, %7 : vector<8x32xf32>
    %9 = arith.mulf %8, %8 : vector<8x32xf32>
    %cst_3 = arith.constant dense<0.000000e+00> : vector<8xf32>
    %10 = vector.multi_reduction <add>, %9, %cst_3 [1] : vector<8x32xf32> to vector<8xf32>
    %11 = vector.shape_cast %10 : vector<8xf32> to vector<8x1xf32>
    %cst_4 = arith.constant 0.0322580636 : f32
    %12 = vector.broadcast %cst_4 : f32 to vector<8x1xf32>
    %13 = arith.mulf %11, %12 : vector<8x1xf32>
    %14 = math.sqrt %13 : vector<8x1xf32>
    %cst_5 = arith.constant 9.99999997E-7 : f32
    %15 = vector.broadcast %cst_5 : f32 to vector<8x1xf32>
    %16 = arith.addf %14, %15 : vector<8x1xf32>
    %17 = vector.broadcast %0 : f32 to vector<8x1xf32>
    %18 = arith.divf %17, %16 : vector<8x1xf32>
    %19 = vector.broadcast %18 : vector<8x1xf32> to vector<8x32xf32>
    %20 = arith.mulf %8, %19 : vector<8x32xf32>
    %21 = vector.broadcast %1 : f32 to vector<8x32xf32>
    %22 = arith.addf %20, %21 : vector<8x32xf32>
    %c0_6 = arith.constant 0 : index
    %c0_7 = arith.constant 0 : index
    %23 = vector.load %arg3[%c0_6, %c0_7] : memref<8x32xf32, #tpu.memory_space<vmem>>, vector<8x32xf32>
    tpu.vector_store %arg3[%c0_6, %c0_7], %22 {strides = array<i32>} : memref<8x32xf32, #tpu.memory_space<vmem>>, vector<8x32xf32>,
    return
  }
  func.func @transform_0(%arg0: i32) -> i32 {
    %c0_i32 = arith.constant 0 : i32
    %c0_i32_0 = arith.constant 0 : i32
    return %c0_i32 : i32
  }
  func.func @transform_1(%arg0: i32) -> (i32, i32) {
    %c0_i32 = arith.constant 0 : i32
    %c0_i32_0 = arith.constant 0 : i32
    return %arg0, %c0_i32 : i32, i32
  }
  func.func @transform_2(%arg0: i32) -> (i32, i32) {
    %c0_i32 = arith.constant 0 : i32
    %c0_i32_0 = arith.constant 0 : i32
    return %arg0, %c0_i32 : i32, i32
  }
}

</mosaic_0001>

<bundles_post_ra>
// kernel: tpu_custom_call.1
= control target key start
LH: loop header
LB: loop body
LE: loop exit
PB: predicated region body
PF: predicated region fallthrough
CT: control target
= control target key end

     0   :  { %7 = vsyncpa [#allocation5], 0  ;;  %s718_s0 = inlined_call_operand.hbm [shape: f32[2], index: 0, kind: input, shape index: {}]   ;;  %s719_s1 = inlined_call_operand.hbm [shape: f32[16,32], index: 1, kind: input, shape index: {}]   ;;  %s720_s2 = inlined_call_operand.hbm [shape: f32[16,32], index: 2, kind: output, shape index: {}]  }
   0x1   :  { %8 = vsyncpa [#allocation3], 0 }
   0x2   :  { %10 = vsyncpa [#allocation3 + $0x1], 0 }
   0x3   :  { %11 = vsyncpa [#allocation4], 0 }
   0x4   :  { %13 = vsyncpa [#allocation4 + $0x1], 0  ;;  %s506_s9 = smov 0   ;;  %s508_s10 = smov 0  }
   0x5   :  { %s510_s11 = smov 0   ;;  %s512_s12 = smov 0  }
   0x6 LB: > { %s527_s13 = sadd.s32 4294967295, %s486_s12   ;;  %s297_s14 = sadd.s32 4294967294, %s486_s12   ;;  %s486_s12 = sphi %s512_s12, %s741_s12   ;;  %s482_s11 = sphi %s510_s11, %s740_s11   ;;  %s478_s10 = sphi %s508_s10, %s739_s10   ;;  %s474_s9 = sphi %s506_s9, %s738_s9  }
   0x7   : > { %p60_p0 = scmp.ne.s32.totalorder %s478_s10, %s474_s9  ;;  %p721_p1 = scmp.eq.s32.totalorder %s527_s13, 0 }
   0x8   : > { %p90_p3 = scmp.eq.s32.totalorder %s297_s14, 1  ;;  %p298_p5 = scmp.ge.s32.totalorder %s486_s12, 1 }
   0x9   : > { %p536_p4 = por %p721_p1, %p60_p0  ;;  %p97_p7 = scmp.lt.s32.totalorder %s486_s12, 3 }
   0xa   : > { %p541_p6 = por %p90_p3, %p60_p0  ;;  %s552_s18 = sadd.s32 1, %s486_s12  }
   0xb   : > { %s724_s15 = scalar_select %p536_p4, 1, 0 }
   0xc   : > { %s725_s16 = scalar_select %p541_p6, 1, 0 }
   0xd   : > { %p546_p8 = pnand %p298_p5, %p97_p7  ;;  %s44_s19 = ssub.s32 %s486_s12, %s552_s18 }
   0xe   : > { %s47_s20 = sadd.s32 1, %s482_s11  ;;  %p565_p12 = scmp.eq.s32.totalorder %s44_s19, 0 }
   0xf   : > { %p320_p10 = pneg %p546_p8  ;;  %p54_p13 = scmp.ne.s32.totalorder %s482_s11, %s478_s10 }
  0x10   : > { %p55_p0 = scmp.eq.s32.totalorder %s486_s12, 0  ;;  %p333_p3 = scmp.lt.s32.totalorder %s486_s12, 2 }
  0x11   : > { %p561_p11 = pnand %p320_p10, %p721_p1  ;;  %s373_s25 = scalar_lea.hbm %s718_s0, 16 }
  0x12   : > { %p374_p5 = scmp.ne.s32.totalorder %s718_s0, %s373_s25  ;;  %p380_p1 = scmp.lt.u32.totalorder %s373_s25, %s718_s0 }
  0x13   : > { %p375_p7 = pneg %p561_p11 }
  0x15   : > { %p376_p10 = pnand %p375_p7, %p374_p5 }
  0x17   : > { %p377_p9 = pneg %p376_p10 }
  0x19   : > { %p382_p2 = pnand %p380_p1, %p377_p9 }
  0x1b   : > { %385 = shalt.err (!%p382_p2)
}
  0x1c   : > { %s488_s30 = smov [#allocation2]   ;;  %p56_p1 = por %p55_p0, %p54_p13 }
  0x1d   : > { %323 = dma.hbm_to_smem (!%p561_p11), %s718_s0, 16, %s488_s30, [#allocation5]  }
  0x1e   : > { %s592_s5 = scalar_select %p565_p12, %s482_s11, %s47_s20  }
  0x1f   : > { %p729_p2 = scmp.eq.s32.totalorder %s527_s13, 1  ;;  %s119_s7 = sand.u32 1, %s482_s11  }
  0x20   : > { %s302_s8 = sshll.u32 %s486_s12, 7  ;;  %s301_s14 = sshll.u32 %s119_s7, 3 }
  0x21   : > { %p604_p9 = por %p729_p2, %p54_p13  ;;  %s613_s23 = scalar_lea.hbm %s719_s1, %s302_s8 }
  0x22   : > { %s123_s20 = scalar_lea.vmem [#allocation6], %s301_s14  ;;  %p617_p11 = pnand %p333_p3, %p56_p1 }
  0x23   : > { %s730_s6 = scalar_select %p604_p9, 1, 0 }
  0x24   : > { %s130_s22 = sshll.u32 %s123_s20, 4  ;;  %s120_s25 = scalar_lea.sflag [#allocation3], %s119_s7  ;;  %s621_s22 = int_to_ptr.vmem [resolvable:$true] %s130_s22 }
  0x25   : > { %s386_s26 = scalar_lea.hbm %s613_s23, 128  ;;  %p388_p13 = pneg %p617_p11 }
  0x26   : > { %p387_p12 = scmp.ne.s32.totalorder %s613_s23, %s386_s26  ;;  %s391_s29 = scalar_lea.hbm %s719_s1, 256 }
  0x27   : > { %p392_p3 = scmp.lt.u32.totalorder %s613_s23, %s719_s1  ;;  %p393_p7 = scmp.lt.u32.totalorder %s391_s29, %s386_s26 }
  0x28   : > { %p389_p0 = pnand %p388_p13, %p387_p12  ;;  %p395_p1 = scmp.lt.u32.totalorder %s386_s26, %s613_s23 }
  0x29   : > { %p394_p10 = por %p393_p7, %p392_p3 }
  0x2a   : > { %p390_p5 = pneg %p389_p0 }
  0x2b   : > { %p396_p2 = por %p395_p1, %p394_p10 }
  0x2d   : > { %p397_p6 = pnand %p396_p2, %p390_p5 }
  0x2f   : > { %400 = shalt.err (!%p397_p6)
}
  0x30   : > { %s401_s4 = scalar_lea.vmem %s621_s22, 128  ;;  %s489_s7 = smov [#allocation6]  }
  0x31   : > { %p402_p12 = scmp.ne.s32.totalorder %s621_s22, %s401_s4  ;;  %s406_s8 = sshll.u32 %s489_s7, 4  ;;  %s407_s8 = int_to_ptr.vmem [resolvable:$false] %s406_s8 }
  0x32   : > { %s408_s14 = scalar_lea.vmem %s407_s8, 256  ;;  %p409_p4 = scmp.lt.s32.totalorder %s621_s22, %s407_s8 }
  0x33   : > { %p404_p0 = pnand %p402_p12, %p388_p13  ;;  %p410_p3 = scmp.lt.s32.totalorder %s408_s14, %s401_s4 }
  0x35   : > { %p405_p9 = pneg %p404_p0  ;;  %p411_p7 = por %p410_p3, %p409_p4 }
  0x37   : > { %p412_p10 = pnand %p411_p7, %p405_p9 }
  0x39   : > { %415 = shalt.err (!%p412_p10)
}
  0x3a   : > { %327 = dma.hbm_to_vmem [thread:$0]  (!%p617_p11), %s613_s23, 128, %s621_s22, %s120_s25  }
  0x3b   : > { %139 = sbr.rel (%p546_p8) target bundleno = 416 (0x1a0), region = 28  ;;  %p732_p6 = scmp.eq.s32.totalorder (!%p546_p8), %s527_s13, 0 }
  0x42   : > { %461 = dma.done.wait (%p732_p6), [#allocation5], 16   ;;  %p733_p13 = pmov %p732_p6 }
  0x43   : > { %s655_s19 = sand.u32 1, %s478_s10   ;;  %p734_p4 = scmp.ne.s32.totalorder %s724_s15, 0 }
  0x44   : > { %463 = vsyncadd (%p733_p13), [#allocation5], 4294967280  ;;  %s305_s21 = sshll.u32 %s655_s19, 3  ;;  %s146_s20 = scalar_lea.sflag [#allocation3], %s655_s19 }
  0x45   : > { %s149_s23 = scalar_lea.vmem [#allocation6], %s305_s21 }
  0x46   : > { %465 = dma.done.wait (%p734_p4), %s146_s20, 128  }
  0x47   : > { %467 = vsyncadd (%p734_p4), %s146_s20, 4294967168 }
  0x48   : > { %154 = sfence }
  0x49   : > { %v173_v0 = vld [vmem:[%s149_s23] sm:$0xff]  ;;  %vm174_vm0 = vcmask 261120   ;;  %s171_s15 = sld [smem:[#allocation2]]  ;;  %s307_s17 = sld [smem:[#allocation2 + $0x1]] }
  0x4a   : > { %v175_v1 = vsel %vm174_vm0, %v173_v0, 0.0  ;;  %s309_s22 = sshll.u32 %s527_s13, 7  ;;  %s170_s24 = scalar_lea.vmem [#allocation7], %s305_s21 }
  0x4b   : > { %176 = vadd.xlane.f32.xlu0 %v175_v1  ;;  %s215_s25 = sshll.u32 %s170_s24, 4  ;;  %s673_s28 = scalar_lea.hbm %s720_s2, %s309_s22  ;;  %s675_s25 = int_to_ptr.vmem [resolvable:$true] %s215_s25 }
  0x4c   : > { %s202_s29 = scalar_lea.sflag [#allocation4], %s655_s19  ;;  %s416_s30 = scalar_lea.vmem %s675_s25, 128 }
  0x4d   : > { %p417_p8 = scmp.ne.s32.totalorder %s675_s25, %s416_s30  ;;  %p735_p9 = scmp.ne.s32.totalorder %s730_s6, 0 }
  0x4e   : > { %s490_s13 = smov [#allocation7]  }
  0x4f   : > { %v194_v15 = vstv %s171_s15  ;;  %v198_v18 = vstv %s307_s17  ;;  %p418_p11 = pnand %p417_p8, %p735_p9  ;;  %s420_s3 = sshll.u32 %s490_s13, 4  ;;  %s421_s3 = int_to_ptr.vmem [resolvable:$false] %s420_s3 }
  0x50   : > { %s422_s4 = scalar_lea.vmem %s421_s3, 256  ;;  %p423_p1 = scmp.lt.s32.totalorder %s675_s25, %s421_s3 }
  0x51   : > { %p419_p5 = pneg %p418_p11  ;;  %p424_p2 = scmp.lt.s32.totalorder %s422_s4, %s416_s30 }
  0x53   : > { %p425_p12 = por %p424_p2, %p423_p1 }
  0x55   : > { %p426_p0 = pnand %p425_p12, %p419_p5 }
  0xd8   : > { %v177_v2 = vpop.xlane.xlu0 %176 }
  0xd9   : > { %v179_v3 = vmul.f32 0.03125, %v177_v2 }
  0xdb   : > { %v180_v4 = vsub.f32 %v173_v0, %v179_v3 }
  0xdd   : > { %v181_v5 = vmul.f32 %v180_v4, %v180_v4 }
  0xdf   : > { %v182_v6 = vsel %vm174_vm0, %v181_v5, 0.0 }
  0xe0   : > { %183 = vadd.xlane.f32.xlu0 %v182_v6 }
 0x16d   : > { %v184_v7 = vpop.xlane.xlu0 %183 }
 0x16e   : > { %v185_v8 = vmul.f32 0.032258064, %v184_v7 }
 0x170   : > { %369 = vrsqrt.f32 %v185_v8  ;;  %vm188_vm1 = vcmp.eq.f32.partialorder %v185_v8, inf  ;;  %v191_v11 = vand.u32 2147483648, %v185_v8  ;;  %vm190_vm2 = vcmp.eq.f32.partialorder %v185_v8, 0.0 }
 0x17a   : > { %v370_v9 = vpop.eup %369 }
 0x17b   : > { %v187_v10 = vmul.f32 %v370_v9, %v185_v8 }
 0x17d   : > { %v189_v12 = vsel %vm188_vm1, %v185_v8, %v187_v10 }
 0x17e   : > { %v192_v13 = vsel %vm190_vm2, %v191_v11, %v189_v12 }
 0x17f   : > { %v193_v14 = vadd.f32 1e-06, %v192_v13 }
 0x181   : > { %371 = vrcp.f32 %v193_v14 }
 0x18b   : > { %v372_v16 = vpop.eup %371 }
 0x18c   : > { %v196_v17 = vmul.f32 %v372_v16, %v194_v15 }
 0x18e   : > { %v197_v19 = vmul.f32 %v196_v17, %v180_v4 }
 0x190   : > { %v199_v20 = vadd.f32 %v198_v18, %v197_v19 }
 0x192   : > { %200 = vst.msk [vmem:[%s170_s24] sm:$0xff] %vm174_vm0, %v199_v20 }
 0x193   : > { %429 = shalt.err (!%p426_p0)
}
 0x194   : > { %s430_s7 = scalar_lea.hbm %s673_s28, 128  ;;  %s434_s19 = scalar_lea.hbm %s720_s2, 256 }
 0x195   : > { %p431_p3 = scmp.ne.s32.totalorder %s673_s28, %s430_s7  ;;  %p435_p6 = scmp.lt.u32.totalorder %s673_s28, %s720_s2 }
 0x196   : > { %p436_p13 = scmp.lt.u32.totalorder %s434_s19, %s430_s7  ;;  %p438_p8 = scmp.lt.u32.totalorder %s430_s7, %s673_s28 }
 0x197   : > { %p432_p7 = pnand %p431_p3, %p735_p9 }
 0x198   : > { %p437_p4 = por %p436_p13, %p435_p6 }
 0x199   : > { %p433_p10 = pneg %p432_p7 }
 0x19a   : > { %p439_p11 = por %p438_p8, %p437_p4 }
 0x19c   : > { %p440_p5 = pnand %p439_p11, %p433_p10 }
 0x19e   : > { %443 = shalt.err (!%p440_p5)
}
 0x19f   : > { %318 = dma.vmem_to_hbm [thread:$0]  (%p735_p9), %s675_s25, 128, %s673_s28, %s202_s29  }
 0x1a0 PF: > { %s227_s23 = sand.u32 1, %s474_s9   ;;  %p736_p1 = scmp.ne.s32.totalorder %s725_s16, 0 }
 0x1a1   : > { %p737_p2 = scmp.ge.s32.totalorder %s486_s12, 2  ;;  %s228_s15 = scalar_lea.sflag [#allocation4], %s227_s23 }
 0x1a3   : > { %p329_p12 = pnand %p737_p2, %p736_p1 }
 0x1a5   : > { %469 = dma.done.wait (!%p329_p12), %s228_s15, 128  }
 0x1a6   : > { %471 = vsyncadd (!%p329_p12), %s228_s15, 4294967168  ;;  %p16_p0 = scmp.ge.s32.totalorder %s552_s18, 4   ;;  %s738_s9 = smov %s478_s10 }
 0x1a7   : > { %s739_s10 = smov %s482_s11  ;;  %s740_s11 = smov %s592_s5 }
 0x1a8   : > { %s741_s12 = smov %s552_s18  ;;  %18 = sbr.rel (!%p16_p0) target bundleno = 6 (0x6), region = 78 }
 0x1af   :  { %233 = vsyncpa [#allocation3], 1 }
 0x1b0   :  { %235 = vsyncpa [#allocation3 + $0x1], 1 }
 0x1b1   :  { %236 = vsyncpa [#allocation4], 1 }
 0x1b2   :  { %238 = vsyncpa [#allocation4 + $0x1], 1 }
 0x1b3   :  { %239 = vsyncpa [#allocation5], 1 }
 0x1b4   :  { %241 = vsyncpa [#allocation5 + $0x1], 1 }

</bundles_post_ra>
